<compile_context>
chip_gen: v6e
topology: v6e:2x2x1
jax: 0.10.0
libtpu: 0.0.40
codegen_flags: <defaults>
</compile_context>

<pallas_src>
import math
import functools
from itertools import groupby

import numpy as np
import jax
import jax.numpy as jnp
from jax import lax
from jax.experimental import pallas as pl
from jax.experimental.pallas import tpu as pltpu


# ----------------------------- Pallas kernels ------------------------------

def _linear_kernel(x_ref, w_ref, b_ref, o_ref):
    x = x_ref[...].astype(jnp.bfloat16)          # bf16 MXU operands
    o_ref[...] = (jnp.dot(x, w_ref[...], preferred_element_type=jnp.float32)
                  + b_ref[...]).astype(o_ref.dtype)


def pallas_linear(x, w, b, tm=256):
    """x: (M, K) f32, w: (K, N) bf16 (pre-transposed), b: (N,) f32 -> f32."""
    M, K = x.shape
    N = w.shape[1]
    tm = min(tm, M)
    return pl.pallas_call(
        _linear_kernel,
        out_shape=jax.ShapeDtypeStruct((M, N), jnp.float32),
        grid=(pl.cdiv(M, tm),),
        in_specs=[pl.BlockSpec((tm, K), lambda i: (i, 0)),
                  pl.BlockSpec((K, N), lambda i: (0, 0)),
                  pl.BlockSpec((1, N), lambda i: (0, 0))],
        out_specs=pl.BlockSpec((tm, N), lambda i: (i, 0)),
        compiler_params=pltpu.CompilerParams(
            dimension_semantics=("parallel",)),
    )(x, w, b.reshape(1, N))


def _attn_kernel(q_ref, k_ref, v_ref, o_ref, *, scale):
    q = q_ref[...].astype(jnp.bfloat16)          # (G, T, Dh)
    k = k_ref[...].astype(jnp.bfloat16)          # (G, T, Dh)
    v = v_ref[...].astype(jnp.bfloat16)          # (G, T, Dh)
    # batched q @ k^T without an explicit transpose of k
    s = lax.dot_general(q, k, (((2,), (2,)), ((0,), (0,))),
                        preferred_element_type=jnp.float32) * scale  # (G,T,T)
    s = s - jnp.max(s, axis=-1, keepdims=True)
    p = jnp.exp(s)
    p = p * pl.reciprocal(jnp.sum(p, axis=-1, keepdims=True), approx=True)
    o_ref[...] = lax.dot_general(p.astype(jnp.bfloat16), v,
                                 (((2,), (1,)), ((0,), (0,))),
                                 preferred_element_type=jnp.float32
                                 ).astype(o_ref.dtype)


def pallas_attention(q, k, v, scale, block_bh=16):
    """q/k/v: (B*H, T, Dh) f32 -> softmax(q k^T * scale) v per (batch, head).

    Processes `block_bh` (batch, head) pairs per grid step (batched MXU
    matmuls) instead of one pair per step.
    """
    BH, T, Dh = q.shape
    g = min(block_bh, BH)
    kern = functools.partial(_attn_kernel, scale=scale)
    return pl.pallas_call(
        kern,
        out_shape=jax.ShapeDtypeStruct((BH, T, Dh), jnp.float32),
        grid=(pl.cdiv(BH, g),),
        in_specs=[pl.BlockSpec((g, T, Dh), lambda i: (i, 0, 0)),
                  pl.BlockSpec((g, T, Dh), lambda i: (i, 0, 0)),
                  pl.BlockSpec((g, T, Dh), lambda i: (i, 0, 0))],
        out_specs=pl.BlockSpec((g, T, Dh), lambda i: (i, 0, 0)),
        compiler_params=pltpu.CompilerParams(
            dimension_semantics=("parallel",)),
    )(q, k, v)


def _bilstm_kernel(xp_ref, whh_ref, o_ref, h_sc, c_sc):
    """One LSTM direction per grid step (d=0 fwd, d=1 bwd, time reversed by
    index math).  xp_ref: (T, B, 4H) f32, whh_ref: (1, H, 4H) bf16,
    o_ref: (T, B, H) f32."""
    T = xp_ref.shape[0]
    H = h_sc.shape[1]
    d = pl.program_id(0)
    h_sc[...] = jnp.zeros_like(h_sc)
    c_sc[...] = jnp.zeros_like(c_sc)
    whh = whh_ref[0]                                    # (H, 4H) bf16

    def step(t, carry):
        tt = jnp.where(d == 0, t, T - 1 - t)            # reversed time for bwd
        gates = xp_ref[tt] + jnp.dot(h_sc[...].astype(jnp.bfloat16), whh,
                                     preferred_element_type=jnp.float32)
        i_g = jax.nn.sigmoid(gates[:, 0 * H:1 * H])
        f_g = jax.nn.sigmoid(gates[:, 1 * H:2 * H])
        g_g = jnp.tanh(gates[:, 2 * H:3 * H])
        o_g = jax.nn.sigmoid(gates[:, 3 * H:4 * H])
        c_new = f_g * c_sc[...] + i_g * g_g
        h_new = o_g * jnp.tanh(c_new)
        c_sc[...] = c_new
        h_sc[...] = h_new
        o_ref[tt] = h_new
        return carry

    lax.fori_loop(0, T, step, 0, unroll=True)


def pallas_bilstm_layer(xproj, w_hh, H):
    """xproj: (T, B, 8H) f32 (fwd gates in [:4H], bwd gates in [4H:]),
    w_hh: (2, H, 4H) bf16.  Returns (T, B, 2H) = concat(fwd_h, bwd_h)."""
    T, B, _ = xproj.shape
    return pl.pallas_call(
        _bilstm_kernel,
        out_shape=jax.ShapeDtypeStruct((T, B, 2 * H), jnp.float32),
        grid=(2,),
        in_specs=[pl.BlockSpec((T, B, 4 * H), lambda d: (0, 0, d)),
                  pl.BlockSpec((1, H, 4 * H), lambda d: (d, 0, 0))],
        out_specs=pl.BlockSpec((T, B, H), lambda d: (0, 0, d)),
        scratch_shapes=[pltpu.VMEM((B, H), jnp.float32),
                        pltpu.VMEM((B, H), jnp.float32)],
        compiler_params=pltpu.CompilerParams(
            dimension_semantics=("parallel",)),   # fwd/bwd on separate TCs (v7x)
    )(xproj, w_hh)


def _ctc_max_kernel(y_ref, p_ref, i_ref):
    y = y_ref[...]                                       # (m, V) raw logits
    V = y.shape[-1]
    m = jnp.max(y, axis=-1, keepdims=True)
    sumexp = jnp.sum(jnp.exp(y - m), axis=-1, keepdims=True)
    # max softmax prob = exp(m - m) / sumexp = 1 / sumexp  (skip full divide)
    p_ref[...] = pl.reciprocal(sumexp, approx=False)
    # argmax on raw logits (softmax is monotone); first occurrence on ties
    idx = lax.broadcasted_iota(jnp.int32, y.shape, 1)
    idx_masked = jnp.where(y == m, idx, V)
    i_ref[...] = jnp.min(idx_masked, axis=-1, keepdims=True)


def pallas_ctc_max(y2d, tm=512):
    """y2d: (M, V) -> (max softmax prob (M,1) f32, argmax id (M,1) i32)."""
    M, V = y2d.shape
    tm = min(tm, M)
    return pl.pallas_call(
        _ctc_max_kernel,
        out_shape=(jax.ShapeDtypeStruct((M, 1), jnp.float32),
                   jax.ShapeDtypeStruct((M, 1), jnp.int32)),
        grid=(pl.cdiv(M, tm),),
        in_specs=[pl.BlockSpec((tm, V), lambda i: (i, 0))],
        out_specs=(pl.BlockSpec((tm, 1), lambda i: (i, 0)),
                   pl.BlockSpec((tm, 1), lambda i: (i, 0))),
        compiler_params=pltpu.CompilerParams(
            dimension_semantics=("parallel",)),
    )(y2d)


# ----------------------------- glue (plain JAX / host) ---------------------

def mha_self_attention(x, params, heads=8):
    """PyTorch nn.MultiheadAttention(embed=256, heads=8), eval, self-attn."""
    T, B, E = x.shape
    Dh = E // heads
    x2 = x.reshape(T * B, E)
    qkv = pallas_linear(x2, params['mha_in_w'], params['mha_in_b'])
    q, k, v = jnp.split(qkv, 3, axis=-1)

    def to_heads(a):
        return (a.reshape(T, B, heads, Dh)
                 .transpose(1, 2, 0, 3)
                 .reshape(B * heads, T, Dh))

    o = pallas_attention(to_heads(q), to_heads(k), to_heads(v),
                         scale=1.0 / math.sqrt(Dh))
    o = (o.reshape(B, heads, T, Dh)
          .transpose(2, 0, 1, 3)
          .reshape(T * B, E))
    out = pallas_linear(o, params['mha_out_w'], params['mha_out_b'])
    return out.reshape(T, B, E)


def bilstm(x, lstm_params, H=256):
    """PyTorch nn.LSTM(512, 256, num_layers, bidirectional=True), eval.

    Per layer: one fused (fwd+bwd) input-projection matmul, then one Pallas
    kernel running both directions on a grid=(2,) axis (no reverse copies)."""
    T, B, _ = x.shape
    inp = x
    for layer in lstm_params:
        xproj = pallas_linear(inp.reshape(T * B, -1), layer['w_ih'],
                              layer['b']).reshape(T, B, 8 * H)
        inp = pallas_bilstm_layer(xproj, layer['w_hh'], H)      # (T, B, 2H)
    return inp


def ctc_decode_host(ctc_probs, ctc_ids, vocab, threshold):
    """Faithful numpy port of the Python-loop CTC collapse / masking."""
    T, B = ctc_ids.shape
    blank = vocab - 1
    mask_tok = vocab - 2
    output = np.full((T, B), blank, dtype=np.int32)
    mask_indexes_final = []
    for i in range(B):
        ids_i = ctc_ids[:, i]
        preds = np.array([k for k, _ in groupby(ids_i.tolist())], dtype=np.int64)
        probs = []
        count = 0
        for j, pred in enumerate(preds):
            p = -1.0
            while count < T and pred == ids_i[count]:
                if p < ctc_probs[count, i]:
                    p = float(ctc_probs[count, i])
                count += 1
            probs.append(p)
        probs = np.array(probs, dtype=np.float32)
        pred_idxs = np.nonzero(preds != blank)[0]
        mask_idxs = np.nonzero(probs < threshold)[0]
        mi = []
        for j in range(pred_idxs.shape[0]):
            output[j, i] = preds[int(pred_idxs[j])]
            if (int(pred_idxs[j]) == mask_idxs).sum():
                output[j, i] = mask_tok
                mi.append(j)
        mask_indexes_final.append(np.array(mi, dtype=np.float32))
    return output, mask_indexes_final


def init_params(key, num_layers, vocab, E=256, H=256, IN=512):
    ks = iter(jax.random.split(key, 64))

    def nrm(shape, scale=0.08, dtype=jnp.float32):
        return (scale * jax.random.normal(next(ks), shape,
                                          dtype=jnp.float32)).astype(dtype)

    # Weights stored pre-transposed as (K, N) and in bf16 (MXU-native);
    # biases / embedding stay f32.
    params = {
        'mha_in_w': nrm((E, 3 * E), dtype=jnp.bfloat16),
        'mha_in_b': nrm((3 * E,)),
        'mha_out_w': nrm((E, E), dtype=jnp.bfloat16),
        'mha_out_b': nrm((E,)),
        'emb': nrm((vocab, E)),
        'lin_w': nrm((2 * H, vocab), dtype=jnp.bfloat16),
        'lin_b': nrm((vocab,)),
        'lstm': [],
    }
    for l in range(num_layers):
        in_sz = IN if l == 0 else 2 * H     # both 512 here (bidirectional)
        # fused fwd+bwd input projection: columns [0:4H]=fwd, [4H:8H]=bwd
        w_ih = nrm((in_sz, 8 * H), dtype=jnp.bfloat16)
        b = nrm((8 * H,)) + nrm((8 * H,))   # b_ih + b_hh, both directions
        w_hh = nrm((2, H, 4 * H), dtype=jnp.bfloat16)
        params['lstm'].append({'w_ih': w_ih, 'b': b, 'w_hh': w_hh})
    return params


def mp_ctc_lstm_self_forward(params, x, y, threshold, vocab):
    """x: (T, B, 256), y: (T, B, V) -> ((T, B, V) logits, mask index lists)."""
    T, B, V = y.shape
    # 1) enqueue CTC softmax-max/argmax on TPU
    p2, i2 = pallas_ctc_max(y.reshape(T * B, V))
    # 2) enqueue the CTC-independent attention work BEFORE syncing to host,
    #    so the Python groupby decode overlaps with TPU compute.
    attn = mha_self_attention(x, params)                         # (T, B, 256)
    # 3) host-side greedy CTC collapse (blocks on p2/i2 only)
    ctc_probs = np.asarray(p2).reshape(T, B)
    ctc_ids = np.asarray(i2).reshape(T, B)
    output_ids, mask_indexes_final = ctc_decode_host(
        ctc_probs, ctc_ids, vocab, threshold)
    # 4) remaining TPU work
    emb = jnp.take(params['emb'], jnp.asarray(output_ids), axis=0)  # (T, B, 256)
    feat = jnp.concatenate([emb, attn], axis=-1)                 # (T, B, 512)
    lstm_out = bilstm(feat, params['lstm'])                      # (T, B, 512)
    logits = pallas_linear(lstm_out.reshape(T * B, -1),
                           params['lin_w'], params['lin_b']).reshape(T, B, V)
    return logits, mask_indexes_final


# ----------------------------------- main -----------------------------------

if __name__ == "__main__":
    T, B = 8, 2
    alphabet = [chr(ord('a') + i) for i in range(14)] + ['<mask>', '<blank>']
    V = len(alphabet)          # 16 (V-1 = blank, V-2 = mask token)
    num_layers = 2
    threshold = 0.3
    dropout = 0.0              # eval-mode / zero dropout semantics

    key = jax.random.PRNGKey(0)
    kx, ky, kp = jax.random.split(key, 3)
    x = jax.random.normal(kx, (T, B, 256), dtype=jnp.float32)
    y = jax.random.normal(ky, (T, B, V), dtype=jnp.float32)
    params = init_params(kp, num_layers, V)

    logits, mask_idx_lists = mp_ctc_lstm_self_forward(params, x, y, threshold, V)
    logits = jax.block_until_ready(logits)

    assert logits.shape == (T, B, V)
    assert logits.dtype == jnp.float32
    assert len(mask_idx_lists) == B
    print("KERNEL_OK")
</pallas_src>

<mosaic_0001>
module attributes {stable_mosaic.version = 11 : i64} {
  func.func @_ctc_max_kernel(%arg0: i32, %arg1: memref<16x16xf32, #tpu.memory_space<vmem>>, %arg2: memref<16x1xf32, #tpu.memory_space<vmem>>, %arg3: memref<16x1xi32, #tpu.memory_space<vmem>>) attributes {dimension_semantics = [#tpu.dimension_semantics<parallel>], iteration_bounds = array<i64: 1>, scalar_prefetch = 0 : i64, scratch_operands = 0 : i64, tpu.core_type = #tpu.core_type<tc>, window_params = [{transform_indices = @transform_0, window_bounds = array<i64: 16, 16>}, {transform_indices = @transform_1, window_bounds = array<i64: 16, 1>}, {transform_indices = @transform_2, window_bounds = array<i64: 16, 1>}]} {
    %c0 = arith.constant 0 : index
    %c0_0 = arith.constant 0 : index
    %0 = vector.load %arg1[%c0, %c0_0] : memref<16x16xf32, #tpu.memory_space<vmem>>, vector<16x16xf32>
    %cst = arith.constant dense<0xFF800000> : vector<16xf32>
    %1 = vector.multi_reduction <maximumf>, %0, %cst [1] : vector<16x16xf32> to vector<16xf32>
    %2 = vector.shape_cast %1 : vector<16xf32> to vector<16x1xf32>
    %3 = vector.broadcast %2 : vector<16x1xf32> to vector<16x16xf32>
    %4 = arith.subf %0, %3 : vector<16x16xf32>
    %5 = math.exp %4 : vector<16x16xf32>
    %cst_1 = arith.constant dense<0.000000e+00> : vector<16xf32>
    %6 = vector.multi_reduction <add>, %5, %cst_1 [1] : vector<16x16xf32> to vector<16xf32>
    %7 = vector.shape_cast %6 : vector<16xf32> to vector<16x1xf32>
    %8 = tpu.reciprocal %7 : vector<16x1xf32> -> vector<16x1xf32>
    %c0_2 = arith.constant 0 : index
    %c0_3 = arith.constant 0 : index
    %9 = vector.load %arg2[%c0_2, %c0_3] : memref<16x1xf32, #tpu.memory_space<vmem>>, vector<16x1xf32>
    tpu.vector_store %arg2[%c0_2, %c0_3], %8 {strides = array<i32>} : memref<16x1xf32, #tpu.memory_space<vmem>>, vector<16x1xf32>,
    %10 = tpu.iota {dimensions = array<i32: 1>} : vector<16x16xi32>
    %11 = vector.broadcast %2 : vector<16x1xf32> to vector<16x16xf32>
    %12 = arith.cmpf oeq, %0, %11 : vector<16x16xf32>
    %c16_i32 = arith.constant 16 : i32
    %13 = vector.broadcast %c16_i32 : i32 to vector<16x16xi32>
    %14 = arith.select %12, %10, %13 : vector<16x16xi1>, vector<16x16xi32>
    %cst_4 = arith.constant dense<2147483647> : vector<16xi32>
    %15 = vector.multi_reduction <minsi>, %14, %cst_4 [1] : vector<16x16xi32> to vector<16xi32>
    %16 = vector.shape_cast %15 : vector<16xi32> to vector<16x1xi32>
    %c0_5 = arith.constant 0 : index
    %c0_6 = arith.constant 0 : index
    %17 = vector.load %arg3[%c0_5, %c0_6] : memref<16x1xi32, #tpu.memory_space<vmem>>, vector<16x1xi32>
    tpu.vector_store %arg3[%c0_5, %c0_6], %16 {strides = array<i32>} : memref<16x1xi32, #tpu.memory_space<vmem>>, vector<16x1xi32>,
    return
  }
  func.func @transform_0(%arg0: i32) -> (i32, i32) {
    %c0_i32 = arith.constant 0 : i32
    %c0_i32_0 = arith.constant 0 : i32
    return %arg0, %c0_i32 : i32, i32
  }
  func.func @transform_1(%arg0: i32) -> (i32, i32) {
    %c0_i32 = arith.constant 0 : i32
    %c0_i32_0 = arith.constant 0 : i32
    return %arg0, %c0_i32 : i32, i32
  }
  func.func @transform_2(%arg0: i32) -> (i32, i32) {
    %c0_i32 = arith.constant 0 : i32
    %c0_i32_0 = arith.constant 0 : i32
    return %arg0, %c0_i32 : i32, i32
  }
}

</mosaic_0001>

<bundles_post_ra>
// kernel: tpu_custom_call.1
= control target key start
LH: loop header
LB: loop body
LE: loop exit
PB: predicated region body
PF: predicated region fallthrough
CT: control target
= control target key end

     0   :  { %8 = vsyncpa [#allocation3], 0  ;;  %s130_s9 = smov [#allocation2]   ;;  %s173_s0 = inlined_call_operand.hbm [shape: f32[16,16], index: 0, kind: input, shape index: {}]   ;;  %s174_s1 = inlined_call_operand.vmem [shape: f32[16,1], index: 1, kind: output, shape index: {0}]   ;;  %s175_s2 = inlined_call_operand.vmem [shape: s32[16,1], index: 2, kind: output, shape index: {1}]  }
   0x1   :  { %s14_s10 = sshll.u32 %s130_s9, 4  ;;  %s15_s10 = int_to_ptr.vmem [resolvable:$true] %s14_s10 }
   0x2   :  { %s116_s11 = scalar_lea.vmem %s15_s10, 256  ;;  %p121_p1 = scmp.lt.s32.totalorder %s15_s10, %s15_s10 }
   0x3   :  { %p117_p0 = scmp.ne.s32.totalorder %s15_s10, %s116_s11  ;;  %p122_p2 = scmp.lt.s32.totalorder %s116_s11, %s116_s11 }
   0x5   :  { %p123_p3 = por %p122_p2, %p121_p1 }
   0x7   :  { %p124_p4 = pnand %p123_p3, %p117_p0 }
   0x9   :  { %127 = shalt.err (!%p124_p4)
}
   0xa   :  { %s131_s12 = smov 128   ;;  %s132_s13 = smov 8  }
   0xb   :  { %20 = dma.hbm_to_vmem [thread:$0]  %s173_s0, 256, %s15_s10, [#allocation3], %s131_s12, %s131_s12, %s132_s13  }
   0xc   :  { %128 = dma.done.wait [#allocation3], 256  }
   0xd   :  { %129 = vsyncadd [#allocation3], 4294967040  ;;  %vm26_vm0 = vcmask 130048   ;;  %v24_v0 = vld [vmem:[#allocation2] sm:$0xff]  ;;  %v25_v1 = vld [vmem:[#allocation2 + $0x8] sm:$0xff]  ;;  %v50_v4 = vlaneseq  ;;  %vm47_vm5 = vcmask 7168  }
   0xe   :  { %v27_v2 = vsel %vm26_vm0, %v24_v0, -inf  ;;  %v30_v3 = vsel %vm26_vm0, %v25_v1, -inf }
   0xf   :  { %28 = vmax.xlane.f32.xlu0 %v27_v2  ;;  %v51_v5 = vand.u32 127, %v50_v4 }
  0x13   :  { %31 = vmax.xlane.f32.xlu0 %v30_v3 }
  0x98   :  { %v29_v6 = vpop.xlane.xlu0 %28 }
  0x99   :  { %v33_v7 = vsub.f32 %v24_v0, %v29_v6  ;;  %vm52_vm1 = vcmp.eq.f32.partialorder %v24_v0, %v29_v6 }
  0x9a   :  { %v54_v8 = vsel %vm52_vm1, %v51_v5, 16 }
  0x9b   :  { %v35_v9 = vmul.f32 1.442695, %v33_v7  ;;  %v56_v10 = vsel %vm26_vm0, %v54_v8, 2147483647 }
  0x9c   :  { %v32_v11 = vpop.xlane.xlu0 %31  ;;  %v58_v12 = vshra.s32 %v56_v10, 16  ;;  %v57_v24 = vand.u32 65535, %v56_v10 }
  0x9d   :  { %100 = vpow2.f32 %v35_v9  ;;  %v34_v13 = vsub.f32 %v25_v1, %v32_v11  ;;  %vm53_vm2 = vcmp.eq.f32.partialorder %v25_v1, %v32_v11 }
  0x9e   :  { %v55_v14 = vsel %vm53_vm2, %v51_v5, 16  ;;  %v60_v15 = vcvt.s32.f32 %v58_v12  ;;  %v59_v26 = vcvt.s32.f32 %v57_v24 }
  0x9f   :  { %v37_v16 = vmul.f32 1.442695, %v34_v13  ;;  %v71_v17 = vsel %vm26_vm0, %v55_v14, 2147483647 }
  0xa0   :  { %61 = vmin.xlane.f32.xlu1 %v60_v15  ;;  %v73_v18 = vshra.s32 %v71_v17, 16  ;;  %v72_v27 = vand.u32 65535, %v71_v17 }
  0xa1   :  { %102 = vpow2.f32 %v37_v16 }
  0xa2   :  { %v75_v19 = vcvt.s32.f32 %v73_v18  ;;  %v74_v30 = vcvt.s32.f32 %v72_v27 }
  0xa4   :  { %76 = vmin.xlane.f32.xlu1 %v75_v19 }
  0xaa   :  { %v101_v20 = vpop.eup %100 }
  0xab   :  { %v39_v21 = vsel %vm26_vm0, %v101_v20, 0.0 }
  0xac   :  { %40 = vadd.xlane.f32.xlu0 %v39_v21 }
  0xae   :  { %v103_v22 = vpop.eup %102 }
  0xaf   :  { %v42_v23 = vsel %vm26_vm0, %v103_v22, 0.0 }
  0xb0   :  { %43 = vadd.xlane.f32.xlu1 %v42_v23 }
 0x129   :  { %v62_v25 = vpop.xlane.xlu1 %61 }
 0x12a   :  { %vm63_vm3 = vcmp.eq.f32.partialorder %v60_v15, %v62_v25  ;;  %v68_v36 = vcvt.f32.s32 %v62_v25 }
 0x12b   :  { %v64_v28 = vsel %vm63_vm3, %v59_v26, inf }
 0x12c   :  { %65 = vmin.xlane.f32.xlu0 %v64_v28  ;;  %v69_v38 = vshll.u32 %v68_v36, 16 }
 0x12d   :  { %v77_v29 = vpop.xlane.xlu1 %76 }
 0x12e   :  { %vm78_vm4 = vcmp.eq.f32.partialorder %v75_v19, %v77_v29  ;;  %v83_v39 = vcvt.f32.s32 %v77_v29 }
 0x12f   :  { %v79_v31 = vsel %vm78_vm4, %v74_v30, inf }
 0x130   :  { %80 = vmin.xlane.f32.xlu1 %v79_v31  ;;  %v84_v43 = vshll.u32 %v83_v39, 16 }
 0x135   :  { %v41_v32 = vpop.xlane.xlu0 %40 }
 0x136   :  { %104 = vrcp.f32 %v41_v32 }
 0x139   :  { %v44_v33 = vpop.xlane.xlu1 %43 }
 0x13a   :  { %106 = vrcp.f32 %v44_v33 }
 0x143   :  { %v105_v34 = vpop.eup %104 }
 0x144   :  { %48 = vst.msk [vmem:[%s174_s1] sm:$0xff] %vm47_vm5, %v105_v34 }
 0x147   :  { %v107_v35 = vpop.eup %106 }
 0x148   :  { %49 = vst.msk [vmem:[%s174_s1 + $0x8] sm:$0xff] %vm47_vm5, %v107_v35 }
 0x1b5   :  { %v66_v37 = vpop.xlane.xlu0 %65 }
 0x1b6   :  { %v67_v40 = vcvt.f32.s32 %v66_v37 }
 0x1b8   :  { %v70_v41 = vadd.s32 %v69_v38, %v67_v40 }
 0x1b9   :  { %v81_v42 = vpop.xlane.xlu1 %80 }
 0x1ba   :  { %86 = vst.msk [vmem:[%s175_s2] sm:$0xff] %vm47_vm5, %v70_v41  ;;  %v82_v44 = vcvt.f32.s32 %v81_v42 }
 0x1bc   :  { %v85_v45 = vadd.s32 %v84_v43, %v82_v44 }
 0x1be   :  { %87 = vst.msk [vmem:[%s175_s2 + $0x8] sm:$0xff] %vm47_vm5, %v85_v45 }
 0x1bf   :  { %96 = vsyncpa [#allocation3], 1 }

</bundles_post_ra>
